<compile_context>
chip_gen: v7x
topology: tpu7x:2x2x1
jax: 0.10.0
libtpu: 0.0.40
codegen_flags: <defaults>
</compile_context>

<pallas_src>
import jax
import jax.numpy as jnp
from jax.experimental import pallas as pl
from jax.experimental.pallas import tpu as pltpu

_TARGET_BLOCK_BYTES = 4 << 20  # ~4 MiB per x block: past the per-step-overhead knee


def make_positional_table(max_len, num_hiddens, dtype=jnp.float32):
    """Sinusoidal table identical to the torch __init__ (shape (max_len, H))."""
    assert num_hiddens % 2 == 0, "num_hiddens must be even (sin/cos interleave)"
    pos = jnp.arange(max_len, dtype=jnp.float32)[:, None]
    inv_freq = jnp.power(
        10000.0, jnp.arange(0, num_hiddens, 2, dtype=jnp.float32) / num_hiddens
    )
    angles = pos / inv_freq                                   # (max_len, H//2)
    P = jnp.zeros((max_len, num_hiddens), jnp.float32)
    P = P.at[:, 0::2].set(jnp.sin(angles))
    P = P.at[:, 1::2].set(jnp.cos(angles))
    return P.astype(dtype)


def _pe_add_kernel(x_ref, p_ref, o_ref):
    # x_ref/o_ref: (seq_tile, H) | (b_tile, seq_tile, H) | (b_tile, lane_tile)
    # p_ref:       (seq_tile, H) | (seq_tile, H)          | (1, lane_tile)
    # Trailing-dim broadcasting covers all three layouts; add runs in x dtype.
    o_ref[...] = x_ref[...] + p_ref[...]


def _vmem_capacity_bytes():
    try:
        cap = int(pltpu.get_tpu_info().vmem_capacity_bytes)
    except Exception:
        cap = 64 << 20
    # Treat the reported figure as an upper bound; never assume more than one
    # v7x TensorCore's 64 MiB even if a per-chip capacity were reported.
    return max(16 << 20, min(cap, 64 << 20))


def _sublane(itemsize):
    return 8 * max(1, 4 // itemsize)       # f32: 8, bf16: 16, int8: 32


def _pick_tiles(batch, seq, hidden, itemsize, vmem_cap, seq_tile, b_tile):
    sublane = _sublane(itemsize)
    # x + out + p streams, each double-buffered -> keep one block under cap/12.
    target = max(8 * 128 * itemsize, min(_TARGET_BLOCK_BYTES, vmem_cap // 12))
    row_bytes = hidden * itemsize

    if seq_tile is None:
        rows = max(1, target // row_bytes)
        if rows >= seq:
            seq_tile = seq                  # full-dim block (any length is legal)
        else:
            seq_tile = min(max(sublane, (rows // sublane) * sublane), seq)
    else:
        seq_tile = min(seq_tile, seq)
    # TODO(synk): a num_hiddens so large that `sublane` rows overflow VMEM would
    #             need hidden tiling; unreachable for realistic model sizes.

    if b_tile is None:
        b_tile = 1
        blk_bytes = seq_tile * row_bytes
        if seq_tile == seq and batch > 1 and blk_bytes < target // 2:
            # Full seq fits in one small slab -> tile over batch for >=MB blocks.
            b_tile = min(batch, max(1, target // max(blk_bytes, 1)))
    else:
        b_tile = min(b_tile, batch)
    return b_tile, seq_tile


def _pick_flat_tiles(batch, flat, itemsize, vmem_cap):
    sublane = _sublane(itemsize)
    target = max(sublane * 128 * itemsize, min(_TARGET_BLOCK_BYTES, vmem_cap // 12))
    rows_all = target // (flat * itemsize)  # batch rows per block at full lane width
    if rows_all >= batch:
        return batch, flat
    if rows_all >= sublane:
        return (rows_all // sublane) * sublane, flat
    # Narrow row budget: take min(batch, sublane) rows and tile the lane axis.
    b_tile = batch if batch <= sublane else sublane
    lane_tile = max(128, ((target // (b_tile * itemsize)) // 128) * 128)
    return b_tile, min(lane_tile, flat)


def _tiled_forward(x, p, itemsize, vmem_cap, seq_tile, b_tile):
    batch, seq, hidden = x.shape
    b_tile, seq_tile = _pick_tiles(batch, seq, hidden, itemsize, vmem_cap,
                                   seq_tile, b_tile)
    num_seq_tiles = pl.cdiv(seq, seq_tile)
    num_b_tiles = pl.cdiv(batch, b_tile)
    # batch innermost: P's block index is constant across it (no P re-fetch);
    # the seq-tile axis stays the megacore-sharded "parallel" axis.
    grid = (num_seq_tiles, num_b_tiles)

    if b_tile == 1:
        x_block = (pl.Squeezed(), seq_tile, hidden)   # kernel sees 2-D refs
    else:
        x_block = (b_tile, seq_tile, hidden)

    footprint = 2 * (2 * b_tile * seq_tile + seq_tile) * hidden * itemsize
    vmem_limit = int(min(vmem_cap, max(32 << 20, 2 * footprint)))
    dims = ("parallel", "parallel" if num_seq_tiles == 1 else "arbitrary")

    return pl.pallas_call(
        _pe_add_kernel,
        out_shape=jax.ShapeDtypeStruct((batch, seq, hidden), x.dtype),
        grid_spec=pltpu.PrefetchScalarGridSpec(
            num_scalar_prefetch=0,
            grid=grid,
            in_specs=[
                pl.BlockSpec(x_block, lambda j, b: (b, j, 0)),
                pl.BlockSpec((seq_tile, hidden), lambda j, b: (j, 0)),
            ],
            out_specs=pl.BlockSpec(x_block, lambda j, b: (b, j, 0)),
        ),
        compiler_params=pltpu.CompilerParams(
            dimension_semantics=dims,
            vmem_limit_bytes=vmem_limit,
        ),
    )(x, p)


def _flat_forward(x, p, itemsize, vmem_cap):
    batch, seq, hidden = x.shape
    flat = seq * hidden
    x2 = x.reshape(batch, flat)                  # metadata-only reshape
    p2 = p[:seq].reshape(1, flat)                # tiny (seq, hidden) slab

    b_tile, lane_tile = _pick_flat_tiles(batch, flat, itemsize, vmem_cap)
    num_lane_tiles = pl.cdiv(flat, lane_tile)
    num_b_tiles = pl.cdiv(batch, b_tile)
    grid = (num_lane_tiles, num_b_tiles)

    footprint = 2 * (2 * b_tile + 1) * lane_tile * itemsize
    vmem_limit = int(min(vmem_cap, max(32 << 20, 2 * footprint)))
    dims = ("parallel", "parallel" if num_lane_tiles == 1 else "arbitrary")

    out = pl.pallas_call(
        _pe_add_kernel,
        out_shape=jax.ShapeDtypeStruct((batch, flat), x.dtype),
        grid_spec=pltpu.PrefetchScalarGridSpec(
            num_scalar_prefetch=0,
            grid=grid,
            in_specs=[
                pl.BlockSpec((b_tile, lane_tile), lambda l, b: (b, l)),
                pl.BlockSpec((1, lane_tile), lambda l, b: (0, l)),
            ],
            out_specs=pl.BlockSpec((b_tile, lane_tile), lambda l, b: (b, l)),
        ),
        compiler_params=pltpu.CompilerParams(
            dimension_semantics=dims,
            vmem_limit_bytes=vmem_limit,
        ),
    )(x2, p2)
    return out.reshape(batch, seq, hidden)


def positional_encoding(x, P, *, seq_tile=None, b_tile=None):
    """Forward of PositionalEncoding: x + P[:seq] (dropout = eval-mode identity)."""
    batch, seq, hidden = x.shape
    max_len, p_hidden = P.shape
    assert p_hidden == hidden and seq <= max_len

    # Stream P in the input dtype: halves P's HBM/VMEM footprint for bf16 and
    # removes per-element up/down casts in the kernel body.
    p = P if P.dtype == x.dtype else P.astype(x.dtype)
    itemsize = jnp.dtype(x.dtype).itemsize
    vmem_cap = _vmem_capacity_bytes()

    # Narrow hidden (< 128 lanes): present a lane-dense output by flattening
    # (seq, hidden) into one lane axis so stores are unmasked full-lane vst's.
    if (hidden % 128 != 0 and (seq * hidden) % 128 == 0
            and seq_tile is None and b_tile is None):
        return _flat_forward(x, p, itemsize, vmem_cap)
    return _tiled_forward(x, p, itemsize, vmem_cap, seq_tile, b_tile)


if __name__ == "__main__":
    max_len = 64
    key = jax.random.PRNGKey(0)
    k1, k2, k3, k4 = jax.random.split(key, 4)

    # 1) Main lane-dense path: hidden multiple of 128, batch-tiled blocks.
    P = make_positional_table(max_len, 128)
    X = jax.random.normal(k1, (2, 16, 128), dtype=jnp.float32)
    out = jax.block_until_ready(positional_encoding(X, P))
    ref = X + P[None, :16, :]
    assert jnp.allclose(out, ref, atol=1e-6, rtol=1e-6), "mismatch (main)"

    # 2) Ragged seq without any wrapper pad/slice (forced small seq_tile).
    X2 = jax.random.normal(k2, (2, 20, 128), dtype=jnp.float32)
    out2 = jax.block_until_ready(positional_encoding(X2, P, seq_tile=8))
    ref2 = X2 + P[None, :20, :]
    assert jnp.allclose(out2, ref2, atol=1e-6, rtol=1e-6), "mismatch (ragged seq)"

    # 3) Narrow hidden, lane-dense flattened path (seq*hidden % 128 == 0).
    P3 = make_positional_table(max_len, 32)
    X3 = jax.random.normal(k3, (3, 8, 32), dtype=jnp.float32)
    out3 = jax.block_until_ready(positional_encoding(X3, P3))
    ref3 = X3 + P3[None, :8, :]
    assert jnp.allclose(out3, ref3, atol=1e-6, rtol=1e-6), "mismatch (flat path)"

    # 4) Narrow hidden fallback (seq*hidden not a lane multiple): full-dim blocks.
    X4 = jax.random.normal(k4, (3, 10, 32), dtype=jnp.float32)
    out4 = jax.block_until_ready(positional_encoding(X4, P3))
    ref4 = X4 + P3[None, :10, :]
    assert jnp.allclose(out4, ref4, atol=1e-6, rtol=1e-6), "mismatch (narrow fallback)"

    # 5) bf16 input: P streamed in bf16 (single-rounding add; ~1 bf16 ulp vs f32 ref).
    Xb = jax.random.normal(k1, (2, 16, 128), dtype=jnp.bfloat16)
    outb = jax.block_until_ready(positional_encoding(Xb, P))
    refb = Xb.astype(jnp.float32) + P[None, :16, :]
    assert jnp.allclose(outb.astype(jnp.float32), refb, atol=5e-2), "mismatch (bf16)"

    print("KERNEL_OK")
</pallas_src>

<mosaic_0001>
module attributes {stable_mosaic.version = 11 : i64} {
  func.func @_pe_add_kernel(%arg0: i32, %arg1: i32, %arg2: memref<2x16x128xf32, #tpu.memory_space<vmem>>, %arg3: memref<16x128xf32, #tpu.memory_space<vmem>>, %arg4: memref<2x16x128xf32, #tpu.memory_space<vmem>>) attributes {dimension_semantics = [#tpu.dimension_semantics<parallel>, #tpu.dimension_semantics<parallel>], iteration_bounds = array<i64: 1, 1>, scalar_prefetch = 0 : i64, scratch_operands = 0 : i64, tpu.core_type = #tpu.core_type<tc>, window_params = [{transform_indices = @transform_0, window_bounds = array<i64: 2, 16, 128>}, {transform_indices = @transform_1, window_bounds = array<i64: 16, 128>}, {transform_indices = @transform_2, window_bounds = array<i64: 2, 16, 128>}]} {
    %c0 = arith.constant 0 : index
    %c0_0 = arith.constant 0 : index
    %c0_1 = arith.constant 0 : index
    %0 = vector.load %arg2[%c0, %c0_0, %c0_1] : memref<2x16x128xf32, #tpu.memory_space<vmem>>, vector<2x16x128xf32>
    %c0_2 = arith.constant 0 : index
    %c0_3 = arith.constant 0 : index
    %1 = vector.load %arg3[%c0_2, %c0_3] : memref<16x128xf32, #tpu.memory_space<vmem>>, vector<16x128xf32>
    %2 = vector.shape_cast %1 : vector<16x128xf32> to vector<1x16x128xf32>
    %3 = vector.broadcast %2 : vector<1x16x128xf32> to vector<2x16x128xf32>
    %4 = arith.addf %0, %3 : vector<2x16x128xf32>
    %c0_4 = arith.constant 0 : index
    %c0_5 = arith.constant 0 : index
    %c0_6 = arith.constant 0 : index
    %5 = vector.load %arg4[%c0_4, %c0_5, %c0_6] : memref<2x16x128xf32, #tpu.memory_space<vmem>>, vector<2x16x128xf32>
    tpu.vector_store %arg4[%c0_4, %c0_5, %c0_6], %4 {strides = array<i32>} : memref<2x16x128xf32, #tpu.memory_space<vmem>>, vector<2x16x128xf32>,
    return
  }
  func.func @transform_0(%arg0: i32, %arg1: i32) -> (i32, i32, i32) {
    %c0_i32 = arith.constant 0 : i32
    %c0_i32_0 = arith.constant 0 : i32
    return %arg1, %arg0, %c0_i32 : i32, i32, i32
  }
  func.func @transform_1(%arg0: i32, %arg1: i32) -> (i32, i32) {
    %c0_i32 = arith.constant 0 : i32
    %c0_i32_0 = arith.constant 0 : i32
    return %arg0, %c0_i32 : i32, i32
  }
  func.func @transform_2(%arg0: i32, %arg1: i32) -> (i32, i32, i32) {
    %c0_i32 = arith.constant 0 : i32
    %c0_i32_0 = arith.constant 0 : i32
    return %arg1, %arg0, %c0_i32 : i32, i32, i32
  }
}

</mosaic_0001>

<bundles_post_ra>
// kernel: tpu_custom_call.1
= control target key start
LH: loop header
LB: loop body
LE: loop exit
PB: predicated region body
PF: predicated region fallthrough
CT: control target
= control target key end

     0   :  { %7 = vsyncpa [#allocation3], 0  ;;  %s217_s0 = inlined_call_operand.hbm [shape: f32[2,16,128], index: 0, kind: input, shape index: {}]   ;;  %s218_s1 = inlined_call_operand.hbm [shape: f32[64,128], index: 1, kind: input, shape index: {}]   ;;  %s219_s2 = inlined_call_operand.hbm [shape: f32[2,16,128], index: 2, kind: output, shape index: {}]  }
   0x1   :  { %8 = vsyncpa [#allocation6], 0 }
   0x2   :  { %9 = vsyncpa [#allocation4], 0  ;;  %s149_s9 = smov [#allocation2]   ;;  %s77_s13 = scalar_lea.hbm %s217_s0, 512 }
   0x3   :  { %s15_s10 = sshll.u32 %s149_s9, 4  ;;  %p78_p0 = scmp.ne.s32.totalorder %s217_s0, %s77_s13  ;;  %s16_s10 = int_to_ptr.vmem [resolvable:$true] %s15_s10 }
   0x4   :  { %p81_p1 = scmp.lt.u32.totalorder %s77_s13, %s217_s0 }
   0x6   :  { %p83_p2 = pnand %p81_p1, %p78_p0 }
   0x8   :  { %86 = shalt.err (!%p83_p2)
}
   0x9   :  { %s87_s18 = scalar_lea.vmem %s16_s10, 512  ;;  %p92_p4 = scmp.lt.s32.totalorder %s16_s10, %s16_s10 }
   0xa   :  { %p88_p3 = scmp.ne.s32.totalorder %s16_s10, %s87_s18  ;;  %p93_p5 = scmp.lt.s32.totalorder %s87_s18, %s87_s18 }
   0xc   :  { %p94_p6 = por %p93_p5, %p92_p4 }
   0xe   :  { %p95_p7 = pnand %p94_p6, %p88_p3 }
  0x10   :  { %98 = shalt.err (!%p95_p7)
}
  0x11   :  { %s150_s19 = smov 128   ;;  %s151_s20 = smov 8  }
  0x12   :  { %21 = dma.hbm_to_vmem [thread:$0]  %s217_s0, 512, %s16_s10, [#allocation3], %s150_s19, %s150_s19, %s151_s20  }
  0x13   :  { %s152_s23 = smov [#allocation5]   ;;  %s99_s27 = scalar_lea.hbm %s218_s1, 256 }
  0x14   :  { %s27_s24 = sshll.u32 %s152_s23, 4  ;;  %p100_p8 = scmp.ne.s32.totalorder %s218_s1, %s99_s27  ;;  %s28_s24 = int_to_ptr.vmem [resolvable:$true] %s27_s24 }
  0x15   :  { %s101_s4 = scalar_lea.hbm %s218_s1, 1024  ;;  %p103_p10 = scmp.lt.u32.totalorder %s99_s27, %s218_s1 }
  0x16   :  { %p102_p9 = scmp.lt.u32.totalorder %s101_s4, %s99_s27 }
  0x18   :  { %p104_p11 = por %p103_p10, %p102_p9 }
  0x1a   :  { %p105_p12 = pnand %p104_p11, %p100_p8 }
  0x1c   :  { %108 = shalt.err (!%p105_p12)
}
  0x1d   :  { %s109_s0 = scalar_lea.vmem %s28_s24, 256  ;;  %p114_p0 = scmp.lt.s32.totalorder %s28_s24, %s28_s24 }
  0x1e   :  { %p110_p13 = scmp.ne.s32.totalorder %s28_s24, %s109_s0  ;;  %p115_p1 = scmp.lt.s32.totalorder %s109_s0, %s109_s0 }
  0x20   :  { %p116_p2 = por %p115_p1, %p114_p0 }
  0x22   :  { %p117_p3 = pnand %p116_p2, %p110_p13 }
  0x24   :  { %120 = shalt.err (!%p117_p3)
}
  0x25   :  { %33 = dma.hbm_to_vmem [thread:$0]  %s218_s1, 256, %s28_s24, [#allocation6], %s150_s19, %s150_s19, %s151_s20  }
  0x26   :  { %143 = dma.done.wait [#allocation3], 512  }
  0x27   :  { %144 = vsyncadd [#allocation3], 4294966784 }
  0x28   :  { %145 = dma.done.wait [#allocation6], 256  }
  0x29   :  { %146 = vsyncadd [#allocation6], 4294967040  ;;  %s153_s9 = smov [#allocation7]   ;;  %v40_v0 = vld [vmem:[#allocation2] sm:$0xff]  ;;  %v41_v2 = vld [vmem:[#allocation2 + $0x8] sm:$0xff] }
  0x2a   :  { %s59_s10 = sshll.u32 %s153_s9, 4  ;;  %v44_v1 = vld [vmem:[#allocation5] sm:$0xff]  ;;  %v45_v4 = vld [vmem:[#allocation5 + $0x8] sm:$0xff]  ;;  %v42_v5 = vld [vmem:[#allocation2 + $0x10] sm:$0xff]  ;;  %s60_s10 = int_to_ptr.vmem [resolvable:$true] %s59_s10 }
  0x2b   :  { %v46_v3 = vadd.f32 %v44_v1, %v40_v0  ;;  %v43_v6 = vld [vmem:[#allocation2 + $0x18] sm:$0xff]  ;;  %v47_v7 = vadd.f32 %v45_v4, %v41_v2  ;;  %v48_v8 = vadd.f32 %v44_v1, %v42_v5  ;;  %s121_s1 = scalar_lea.vmem %s60_s10, 512  ;;  %p126_p5 = scmp.lt.s32.totalorder %s60_s10, %s60_s10 }
  0x2c   :  { %v49_v9 = vadd.f32 %v45_v4, %v43_v6  ;;  %p122_p4 = scmp.ne.s32.totalorder %s60_s10, %s121_s1  ;;  %p127_p6 = scmp.lt.s32.totalorder %s121_s1, %s121_s1 }
  0x2d   :  { %50 = vst [vmem:[#allocation7] sm:$0xff] %v46_v3  ;;  %51 = vst [vmem:[#allocation7 + $0x8] sm:$0xff] %v47_v7 }
  0x2e   :  { %52 = vst [vmem:[#allocation7 + $0x10] sm:$0xff] %v48_v8  ;;  %53 = vst [vmem:[#allocation7 + $0x18] sm:$0xff] %v49_v9  ;;  %p128_p7 = por %p127_p6, %p126_p5 }
  0x30   :  { %p129_p8 = pnand %p128_p7, %p122_p4 }
  0x32   :  { %132 = shalt.err (!%p129_p8)
}
  0x33   :  { %s133_s13 = scalar_lea.hbm %s219_s2, 512 }
  0x34   :  { %p134_p9 = scmp.ne.s32.totalorder %s219_s2, %s133_s13  ;;  %p137_p10 = scmp.lt.u32.totalorder %s133_s13, %s219_s2 }
  0x36   :  { %p139_p11 = pnand %p137_p10, %p134_p9 }
  0x38   :  { %142 = shalt.err (!%p139_p11)
}
  0x39   :  { %65 = dma.vmem_to_hbm [thread:$0]  %s60_s10, 512, %s219_s2, [#allocation4], %s150_s19, %s150_s19, %s151_s20  }
  0x3a   :  { %147 = dma.done.wait [#allocation4], 512  }
  0x3b   :  { %148 = vsyncadd [#allocation4], 4294966784 }
  0x3c   :  { %69 = vsyncpa [#allocation3], 1 }
  0x3d   :  { %70 = vsyncpa [#allocation6], 1 }
  0x3e   :  { %71 = vsyncpa [#allocation4], 1 }

</bundles_post_ra>
